<compile_context>
chip_gen: v7x
topology: tpu7x:2x2x1
jax: 0.10.0
libtpu: 0.0.40
codegen_flags: <defaults>
</compile_context>

<pallas_src>
import functools

import numpy as np
import jax
import jax.numpy as jnp
from jax.experimental import pallas as pl
from jax.experimental.pallas import tpu as pltpu


def _make_tap_masks(H, W):
    """(9, H*W) float32 0/1 masks: mask[kh*3+kw] is 1 where tap (kh, kw) of a
    same-padded 3x3 conv reads a pixel that lies inside the image."""
    HW = H * W
    r = np.arange(HW) // W
    c = np.arange(HW) % W
    masks = np.empty((9, HW), dtype=np.float32)
    for kh in range(3):
        for kw in range(3):
            dh, dw = kh - 1, kw - 1
            valid = ((r + dh >= 0) & (r + dh < H) &
                     (c + dw >= 0) & (c + dw < W))
            masks[kh * 3 + kw] = valid.astype(np.float32)
    return masks


def _fused_affine_kernel(x_ref, mask_ref, wf_ref, bf_ref, wg_ref, bg_ref,
                         out_ref, *, Ch, H, W):
    """Fused affine coupling (F then G) for one batch sample.

    x_ref   : (1, 2*Ch, HW) VMEM  input, spatial dims flattened (lane-dense)
    mask_ref: (9, HW)       VMEM  0/1 boundary masks per 3x3 tap
    wf/wg   : (Ch, 9*Ch)    VMEM  conv weights, [co, tap*Ch + ci]
    bf/bg   : (Ch, 1)       VMEM  conv biases (column)
    out_ref : (1, 2*Ch, HW) VMEM  output: channels [0:Ch]=y1, [Ch:2Ch]=y2
    """
    HW = H * W
    f32 = jnp.float32

    x = x_ref[0].astype(f32)                     # (2*Ch, HW)
    x1 = x[:Ch, :]                               # (Ch, HW)
    x2 = x[Ch:, :]                               # (Ch, HW), reused by G step

    # Boundary masks for the 8 non-center taps: loaded once, shared by F & G.
    tap_mask = {t: mask_ref[t:t + 1, :] for t in range(9) if t != 4}

    def conv3x3(xin, w_ref, b_ref):
        # Same-padded 3x3 cross-correlation on the flattened (H, W) grid.
        # xin: (Ch, HW) f32.  Returns t = conv(xin) + bias as (Ch, HW) f32.
        w = w_ref[...]                           # (Ch, 9*Ch), one vector load
        acc = jnp.zeros((Ch, HW), dtype=f32)     # stacked accumulator
        for kh in range(3):
            for kw in range(3):
                tap = kh * 3 + kw
                shift = (kh - 1) * W + (kw - 1)
                if shift == 0:
                    win = xin
                else:
                    # win[c, h*W+w] = xin[c, (h+dh)*W+(w+dw)], 0 outside the
                    # image: XLU lane-rotate + precomputed boundary mask.
                    win = (pltpu.roll(xin, (-shift) % HW, axis=1)
                           * tap_mask[tap])
                for ci in range(Ch):
                    col = tap * Ch + ci
                    w_col = w[:, col:col + 1]              # (Ch, 1)
                    acc = acc + w_col * win[ci:ci + 1, :]  # broadcast FMA
        return acc + b_ref[...]                  # bias column broadcast-add

    # ---- F step:  t1 = convF(x2);  y1 = x1 * exp(t1) + t1 ----
    t1 = conv3x3(x2, wf_ref, bf_ref)
    y1 = x1 * jnp.exp(t1) + t1                   # stays in vregs for G step
    out_ref[0, :Ch, :] = y1.astype(out_ref.dtype)   # one dense (Ch, HW) store

    # ---- G step:  t2 = convG(y1);  y2 = x2 * exp(t2) + t2 ----
    t2 = conv3x3(y1, wg_ref, bg_ref)
    y2 = x2 * jnp.exp(t2) + t2
    out_ref[0, Ch:, :] = y2.astype(out_ref.dtype)   # one dense (Ch, HW) store


@jax.jit
def affine_block_forward(x, wF, bF, wG, bG):
    """memcnn AffineBlock.forward with naive-affine-adapted conv couplings."""
    N, C, H, W = x.shape
    Ch = C // 2
    HW = H * W

    xf = x.reshape(N, C, HW)                      # free row-major collapse
    masks = jnp.asarray(_make_tap_masks(H, W))    # (9, HW) trace-time constant

    # OIHW -> (Co, kh, kw, Ci) -> (Co, 9*Ci): column index = (kh*3+kw)*Ci + ci.
    wF2 = jnp.transpose(wF, (0, 2, 3, 1)).reshape(Ch, 9 * Ch).astype(jnp.float32)
    wG2 = jnp.transpose(wG, (0, 2, 3, 1)).reshape(Ch, 9 * Ch).astype(jnp.float32)
    bF2 = bF.reshape(Ch, 1).astype(jnp.float32)
    bG2 = bG.reshape(Ch, 1).astype(jnp.float32)

    kernel = functools.partial(_fused_affine_kernel, Ch=Ch, H=H, W=W)
    out = pl.pallas_call(
        kernel,
        out_shape=jax.ShapeDtypeStruct((N, C, HW), x.dtype),
        grid=(N,),
        in_specs=[
            pl.BlockSpec((1, C, HW), lambda n: (n, 0, 0)),       # x (lane-dense)
            pl.BlockSpec((9, HW), lambda n: (0, 0)),             # tap masks
            pl.BlockSpec((Ch, 9 * Ch), lambda n: (0, 0)),        # wF (VMEM)
            pl.BlockSpec((Ch, 1), lambda n: (0, 0)),             # bF (VMEM)
            pl.BlockSpec((Ch, 9 * Ch), lambda n: (0, 0)),        # wG (VMEM)
            pl.BlockSpec((Ch, 1), lambda n: (0, 0)),             # bG (VMEM)
        ],
        out_specs=pl.BlockSpec((1, C, HW), lambda n: (n, 0, 0)),
        compiler_params=pltpu.CompilerParams(
            dimension_semantics=("parallel",)),
    )(xf, masks, wF2, bF2, wG2, bG2)
    return out.reshape(N, C, H, W)


# ---------------- pure-JAX reference (for correctness check) ----------------
def _conv_ref(x, w, b):
    out = jax.lax.conv_general_dilated(
        x, w, window_strides=(1, 1), padding=((1, 1), (1, 1)),
        dimension_numbers=("NCHW", "OIHW", "NCHW"),
        precision=jax.lax.Precision.HIGHEST)
    return out + b[None, :, None, None]


def affine_block_forward_ref(x, wF, bF, wG, bG):
    x1, x2 = jnp.split(x, 2, axis=1)
    t1 = _conv_ref(x2, wF, bF)
    y1 = x1 * jnp.exp(t1) + t1
    t2 = _conv_ref(y1, wG, bG)
    y2 = x2 * jnp.exp(t2) + t2
    return jnp.concatenate([y1, y2], axis=1)


if __name__ == "__main__":
    key = jax.random.PRNGKey(0)
    k_x, k_wf, k_bf, k_wg, k_bg = jax.random.split(key, 5)

    N, C, H, W = 2, 4, 16, 16            # x: (2, 4, 16, 16), C must be even
    Ch = C // 2

    x = jax.random.normal(k_x, (N, C, H, W), dtype=jnp.float32)
    # Conv2d(Ch, Ch, kernel_size=3, padding=1) weights, OIHW like PyTorch.
    wF = 0.1 * jax.random.normal(k_wf, (Ch, Ch, 3, 3), dtype=jnp.float32)
    bF = 0.1 * jax.random.normal(k_bf, (Ch,), dtype=jnp.float32)
    wG = 0.1 * jax.random.normal(k_wg, (Ch, Ch, 3, 3), dtype=jnp.float32)
    bG = 0.1 * jax.random.normal(k_bg, (Ch,), dtype=jnp.float32)

    out = jax.block_until_ready(affine_block_forward(x, wF, bF, wG, bG))

    ref = affine_block_forward_ref(x, wF, bF, wG, bG)
    assert out.shape == (N, C, H, W)
    assert jnp.allclose(out, ref, atol=1e-4, rtol=1e-4), "mismatch vs reference"

    print("KERNEL_OK")
</pallas_src>

<mosaic_0001>
module attributes {stable_mosaic.version = 11 : i64} {
  func.func @_fused_affine_kernel(%arg0: i32, %arg1: memref<1x4x256xf32, #tpu.memory_space<vmem>>, %arg2: memref<9x256xf32, #tpu.memory_space<vmem>>, %arg3: memref<2x18xf32, #tpu.memory_space<vmem>>, %arg4: memref<2x1xf32, #tpu.memory_space<vmem>>, %arg5: memref<2x18xf32, #tpu.memory_space<vmem>>, %arg6: memref<2x1xf32, #tpu.memory_space<vmem>>, %arg7: memref<1x4x256xf32, #tpu.memory_space<vmem>>) attributes {dimension_semantics = [#tpu.dimension_semantics<parallel>], iteration_bounds = array<i64: 2>, scalar_prefetch = 0 : i64, scratch_operands = 0 : i64, tpu.core_type = #tpu.core_type<tc>, window_params = [{transform_indices = @transform_0, window_bounds = array<i64: 1, 4, 256>}, {pipeline_mode = #tpu.pipeline_mode<synchronous>, transform_indices = @transform_1, window_bounds = array<i64: 9, 256>}, {pipeline_mode = #tpu.pipeline_mode<synchronous>, transform_indices = @transform_2, window_bounds = array<i64: 2, 18>}, {pipeline_mode = #tpu.pipeline_mode<synchronous>, transform_indices = @transform_3, window_bounds = array<i64: 2, 1>}, {pipeline_mode = #tpu.pipeline_mode<synchronous>, transform_indices = @transform_4, window_bounds = array<i64: 2, 18>}, {pipeline_mode = #tpu.pipeline_mode<synchronous>, transform_indices = @transform_5, window_bounds = array<i64: 2, 1>}, {transform_indices = @transform_6, window_bounds = array<i64: 1, 4, 256>}]} {
    %c0 = arith.constant 0 : index
    %c0_0 = arith.constant 0 : index
    %c0_1 = arith.constant 0 : index
    %0 = vector.load %arg1[%c0, %c0_0, %c0_1] : memref<1x4x256xf32, #tpu.memory_space<vmem>>, vector<1x4x256xf32>
    %1 = vector.shape_cast %0 : vector<1x4x256xf32> to vector<4x256xf32>
    %2 = vector.extract_strided_slice %1 {offsets = [0, 0], sizes = [2, 256], strides = [1, 1]} : vector<4x256xf32> to vector<2x256xf32>
    %3 = vector.extract_strided_slice %1 {offsets = [2, 0], sizes = [2, 256], strides = [1, 1]} : vector<4x256xf32> to vector<2x256xf32>
    %c0_2 = arith.constant 0 : index
    %c0_3 = arith.constant 0 : index
    %4 = vector.load %arg2[%c0_2, %c0_3] : memref<9x256xf32, #tpu.memory_space<vmem>>, vector<1x256xf32>
    %c1 = arith.constant 1 : index
    %c0_4 = arith.constant 0 : index
    %5 = vector.load %arg2[%c1, %c0_4] : memref<9x256xf32, #tpu.memory_space<vmem>>, vector<1x256xf32>
    %c2 = arith.constant 2 : index
    %c0_5 = arith.constant 0 : index
    %6 = vector.load %arg2[%c2, %c0_5] : memref<9x256xf32, #tpu.memory_space<vmem>>, vector<1x256xf32>
    %c3 = arith.constant 3 : index
    %c0_6 = arith.constant 0 : index
    %7 = vector.load %arg2[%c3, %c0_6] : memref<9x256xf32, #tpu.memory_space<vmem>>, vector<1x256xf32>
    %c5 = arith.constant 5 : index
    %c0_7 = arith.constant 0 : index
    %8 = vector.load %arg2[%c5, %c0_7] : memref<9x256xf32, #tpu.memory_space<vmem>>, vector<1x256xf32>
    %c6 = arith.constant 6 : index
    %c0_8 = arith.constant 0 : index
    %9 = vector.load %arg2[%c6, %c0_8] : memref<9x256xf32, #tpu.memory_space<vmem>>, vector<1x256xf32>
    %c7 = arith.constant 7 : index
    %c0_9 = arith.constant 0 : index
    %10 = vector.load %arg2[%c7, %c0_9] : memref<9x256xf32, #tpu.memory_space<vmem>>, vector<1x256xf32>
    %c8 = arith.constant 8 : index
    %c0_10 = arith.constant 0 : index
    %11 = vector.load %arg2[%c8, %c0_10] : memref<9x256xf32, #tpu.memory_space<vmem>>, vector<1x256xf32>
    %c0_11 = arith.constant 0 : index
    %c0_12 = arith.constant 0 : index
    %12 = vector.load %arg3[%c0_11, %c0_12] : memref<2x18xf32, #tpu.memory_space<vmem>>, vector<2x18xf32>
    %cst = arith.constant 0.000000e+00 : f32
    %13 = vector.broadcast %cst : f32 to vector<2x256xf32>
    %c17_i32 = arith.constant 17 : i32
    %14 = tpu.dynamic_rotate %3 by %c17_i32 dim 1 : vector<2x256xf32>, i32 -> vector<2x256xf32>
    %15 = vector.broadcast %4 : vector<1x256xf32> to vector<2x256xf32>
    %16 = arith.mulf %14, %15 : vector<2x256xf32>
    %17 = vector.extract_strided_slice %12 {offsets = [0, 0], sizes = [2, 1], strides = [1, 1]} : vector<2x18xf32> to vector<2x1xf32>
    %18 = vector.extract_strided_slice %16 {offsets = [0, 0], sizes = [1, 256], strides = [1, 1]} : vector<2x256xf32> to vector<1x256xf32>
    %19 = vector.broadcast %17 : vector<2x1xf32> to vector<2x256xf32>
    %20 = vector.broadcast %18 : vector<1x256xf32> to vector<2x256xf32>
    %21 = arith.mulf %19, %20 : vector<2x256xf32>
    %22 = arith.addf %13, %21 : vector<2x256xf32>
    %23 = vector.extract_strided_slice %12 {offsets = [0, 1], sizes = [2, 1], strides = [1, 1]} : vector<2x18xf32> to vector<2x1xf32>
    %24 = vector.extract_strided_slice %16 {offsets = [1, 0], sizes = [1, 256], strides = [1, 1]} : vector<2x256xf32> to vector<1x256xf32>
    %25 = vector.broadcast %23 : vector<2x1xf32> to vector<2x256xf32>
    %26 = vector.broadcast %24 : vector<1x256xf32> to vector<2x256xf32>
    %27 = arith.mulf %25, %26 : vector<2x256xf32>
    %28 = arith.addf %22, %27 : vector<2x256xf32>
    %c16_i32 = arith.constant 16 : i32
    %29 = tpu.dynamic_rotate %3 by %c16_i32 dim 1 : vector<2x256xf32>, i32 -> vector<2x256xf32>
    %30 = vector.broadcast %5 : vector<1x256xf32> to vector<2x256xf32>
    %31 = arith.mulf %29, %30 : vector<2x256xf32>
    %32 = vector.extract_strided_slice %12 {offsets = [0, 2], sizes = [2, 1], strides = [1, 1]} : vector<2x18xf32> to vector<2x1xf32>
    %33 = vector.extract_strided_slice %31 {offsets = [0, 0], sizes = [1, 256], strides = [1, 1]} : vector<2x256xf32> to vector<1x256xf32>
    %34 = vector.broadcast %32 : vector<2x1xf32> to vector<2x256xf32>
    %35 = vector.broadcast %33 : vector<1x256xf32> to vector<2x256xf32>
    %36 = arith.mulf %34, %35 : vector<2x256xf32>
    %37 = arith.addf %28, %36 : vector<2x256xf32>
    %38 = vector.extract_strided_slice %12 {offsets = [0, 3], sizes = [2, 1], strides = [1, 1]} : vector<2x18xf32> to vector<2x1xf32>
    %39 = vector.extract_strided_slice %31 {offsets = [1, 0], sizes = [1, 256], strides = [1, 1]} : vector<2x256xf32> to vector<1x256xf32>
    %40 = vector.broadcast %38 : vector<2x1xf32> to vector<2x256xf32>
    %41 = vector.broadcast %39 : vector<1x256xf32> to vector<2x256xf32>
    %42 = arith.mulf %40, %41 : vector<2x256xf32>
    %43 = arith.addf %37, %42 : vector<2x256xf32>
    %c15_i32 = arith.constant 15 : i32
    %44 = tpu.dynamic_rotate %3 by %c15_i32 dim 1 : vector<2x256xf32>, i32 -> vector<2x256xf32>
    %45 = vector.broadcast %6 : vector<1x256xf32> to vector<2x256xf32>
    %46 = arith.mulf %44, %45 : vector<2x256xf32>
    %47 = vector.extract_strided_slice %12 {offsets = [0, 4], sizes = [2, 1], strides = [1, 1]} : vector<2x18xf32> to vector<2x1xf32>
    %48 = vector.extract_strided_slice %46 {offsets = [0, 0], sizes = [1, 256], strides = [1, 1]} : vector<2x256xf32> to vector<1x256xf32>
    %49 = vector.broadcast %47 : vector<2x1xf32> to vector<2x256xf32>
    %50 = vector.broadcast %48 : vector<1x256xf32> to vector<2x256xf32>
    %51 = arith.mulf %49, %50 : vector<2x256xf32>
    %52 = arith.addf %43, %51 : vector<2x256xf32>
    %53 = vector.extract_strided_slice %12 {offsets = [0, 5], sizes = [2, 1], strides = [1, 1]} : vector<2x18xf32> to vector<2x1xf32>
    %54 = vector.extract_strided_slice %46 {offsets = [1, 0], sizes = [1, 256], strides = [1, 1]} : vector<2x256xf32> to vector<1x256xf32>
    %55 = vector.broadcast %53 : vector<2x1xf32> to vector<2x256xf32>
    %56 = vector.broadcast %54 : vector<1x256xf32> to vector<2x256xf32>
    %57 = arith.mulf %55, %56 : vector<2x256xf32>
    %58 = arith.addf %52, %57 : vector<2x256xf32>
    %c1_i32 = arith.constant 1 : i32
    %59 = tpu.dynamic_rotate %3 by %c1_i32 dim 1 : vector<2x256xf32>, i32 -> vector<2x256xf32>
    %60 = vector.broadcast %7 : vector<1x256xf32> to vector<2x256xf32>
    %61 = arith.mulf %59, %60 : vector<2x256xf32>
    %62 = vector.extract_strided_slice %12 {offsets = [0, 6], sizes = [2, 1], strides = [1, 1]} : vector<2x18xf32> to vector<2x1xf32>
    %63 = vector.extract_strided_slice %61 {offsets = [0, 0], sizes = [1, 256], strides = [1, 1]} : vector<2x256xf32> to vector<1x256xf32>
    %64 = vector.broadcast %62 : vector<2x1xf32> to vector<2x256xf32>
    %65 = vector.broadcast %63 : vector<1x256xf32> to vector<2x256xf32>
    %66 = arith.mulf %64, %65 : vector<2x256xf32>
    %67 = arith.addf %58, %66 : vector<2x256xf32>
    %68 = vector.extract_strided_slice %12 {offsets = [0, 7], sizes = [2, 1], strides = [1, 1]} : vector<2x18xf32> to vector<2x1xf32>
    %69 = vector.extract_strided_slice %61 {offsets = [1, 0], sizes = [1, 256], strides = [1, 1]} : vector<2x256xf32> to vector<1x256xf32>
    %70 = vector.broadcast %68 : vector<2x1xf32> to vector<2x256xf32>
    %71 = vector.broadcast %69 : vector<1x256xf32> to vector<2x256xf32>
    %72 = arith.mulf %70, %71 : vector<2x256xf32>
    %73 = arith.addf %67, %72 : vector<2x256xf32>
    %74 = vector.extract_strided_slice %12 {offsets = [0, 8], sizes = [2, 1], strides = [1, 1]} : vector<2x18xf32> to vector<2x1xf32>
    %75 = vector.extract_strided_slice %3 {offsets = [0, 0], sizes = [1, 256], strides = [1, 1]} : vector<2x256xf32> to vector<1x256xf32>
    %76 = vector.broadcast %74 : vector<2x1xf32> to vector<2x256xf32>
    %77 = vector.broadcast %75 : vector<1x256xf32> to vector<2x256xf32>
    %78 = arith.mulf %76, %77 : vector<2x256xf32>
    %79 = arith.addf %73, %78 : vector<2x256xf32>
    %80 = vector.extract_strided_slice %12 {offsets = [0, 9], sizes = [2, 1], strides = [1, 1]} : vector<2x18xf32> to vector<2x1xf32>
    %81 = vector.extract_strided_slice %3 {offsets = [1, 0], sizes = [1, 256], strides = [1, 1]} : vector<2x256xf32> to vector<1x256xf32>
    %82 = vector.broadcast %80 : vector<2x1xf32> to vector<2x256xf32>
    %83 = vector.broadcast %81 : vector<1x256xf32> to vector<2x256xf32>
    %84 = arith.mulf %82, %83 : vector<2x256xf32>
    %85 = arith.addf %79, %84 : vector<2x256xf32>
    %c255_i32 = arith.constant 255 : i32
    %86 = tpu.dynamic_rotate %3 by %c255_i32 dim 1 : vector<2x256xf32>, i32 -> vector<2x256xf32>
    %87 = vector.broadcast %8 : vector<1x256xf32> to vector<2x256xf32>
    %88 = arith.mulf %86, %87 : vector<2x256xf32>
    %89 = vector.extract_strided_slice %12 {offsets = [0, 10], sizes = [2, 1], strides = [1, 1]} : vector<2x18xf32> to vector<2x1xf32>
    %90 = vector.extract_strided_slice %88 {offsets = [0, 0], sizes = [1, 256], strides = [1, 1]} : vector<2x256xf32> to vector<1x256xf32>
    %91 = vector.broadcast %89 : vector<2x1xf32> to vector<2x256xf32>
    %92 = vector.broadcast %90 : vector<1x256xf32> to vector<2x256xf32>
    %93 = arith.mulf %91, %92 : vector<2x256xf32>
    %94 = arith.addf %85, %93 : vector<2x256xf32>
    %95 = vector.extract_strided_slice %12 {offsets = [0, 11], sizes = [2, 1], strides = [1, 1]} : vector<2x18xf32> to vector<2x1xf32>
    %96 = vector.extract_strided_slice %88 {offsets = [1, 0], sizes = [1, 256], strides = [1, 1]} : vector<2x256xf32> to vector<1x256xf32>
    %97 = vector.broadcast %95 : vector<2x1xf32> to vector<2x256xf32>
    %98 = vector.broadcast %96 : vector<1x256xf32> to vector<2x256xf32>
    %99 = arith.mulf %97, %98 : vector<2x256xf32>
    %100 = arith.addf %94, %99 : vector<2x256xf32>
    %c241_i32 = arith.constant 241 : i32
    %101 = tpu.dynamic_rotate %3 by %c241_i32 dim 1 : vector<2x256xf32>, i32 -> vector<2x256xf32>
    %102 = vector.broadcast %9 : vector<1x256xf32> to vector<2x256xf32>
    %103 = arith.mulf %101, %102 : vector<2x256xf32>
    %104 = vector.extract_strided_slice %12 {offsets = [0, 12], sizes = [2, 1], strides = [1, 1]} : vector<2x18xf32> to vector<2x1xf32>
    %105 = vector.extract_strided_slice %103 {offsets = [0, 0], sizes = [1, 256], strides = [1, 1]} : vector<2x256xf32> to vector<1x256xf32>
    %106 = vector.broadcast %104 : vector<2x1xf32> to vector<2x256xf32>
    %107 = vector.broadcast %105 : vector<1x256xf32> to vector<2x256xf32>
    %108 = arith.mulf %106, %107 : vector<2x256xf32>
    %109 = arith.addf %100, %108 : vector<2x256xf32>
    %110 = vector.extract_strided_slice %12 {offsets = [0, 13], sizes = [2, 1], strides = [1, 1]} : vector<2x18xf32> to vector<2x1xf32>
    %111 = vector.extract_strided_slice %103 {offsets = [1, 0], sizes = [1, 256], strides = [1, 1]} : vector<2x256xf32> to vector<1x256xf32>
    %112 = vector.broadcast %110 : vector<2x1xf32> to vector<2x256xf32>
    %113 = vector.broadcast %111 : vector<1x256xf32> to vector<2x256xf32>
    %114 = arith.mulf %112, %113 : vector<2x256xf32>
    %115 = arith.addf %109, %114 : vector<2x256xf32>
    %c240_i32 = arith.constant 240 : i32
    %116 = tpu.dynamic_rotate %3 by %c240_i32 dim 1 : vector<2x256xf32>, i32 -> vector<2x256xf32>
    %117 = vector.broadcast %10 : vector<1x256xf32> to vector<2x256xf32>
    %118 = arith.mulf %116, %117 : vector<2x256xf32>
    %119 = vector.extract_strided_slice %12 {offsets = [0, 14], sizes = [2, 1], strides = [1, 1]} : vector<2x18xf32> to vector<2x1xf32>
    %120 = vector.extract_strided_slice %118 {offsets = [0, 0], sizes = [1, 256], strides = [1, 1]} : vector<2x256xf32> to vector<1x256xf32>
    %121 = vector.broadcast %119 : vector<2x1xf32> to vector<2x256xf32>
    %122 = vector.broadcast %120 : vector<1x256xf32> to vector<2x256xf32>
    %123 = arith.mulf %121, %122 : vector<2x256xf32>
    %124 = arith.addf %115, %123 : vector<2x256xf32>
    %125 = vector.extract_strided_slice %12 {offsets = [0, 15], sizes = [2, 1], strides = [1, 1]} : vector<2x18xf32> to vector<2x1xf32>
    %126 = vector.extract_strided_slice %118 {offsets = [1, 0], sizes = [1, 256], strides = [1, 1]} : vector<2x256xf32> to vector<1x256xf32>
    %127 = vector.broadcast %125 : vector<2x1xf32> to vector<2x256xf32>
    %128 = vector.broadcast %126 : vector<1x256xf32> to vector<2x256xf32>
    %129 = arith.mulf %127, %128 : vector<2x256xf32>
    %130 = arith.addf %124, %129 : vector<2x256xf32>
    %c239_i32 = arith.constant 239 : i32
    %131 = tpu.dynamic_rotate %3 by %c239_i32 dim 1 : vector<2x256xf32>, i32 -> vector<2x256xf32>
    %132 = vector.broadcast %11 : vector<1x256xf32> to vector<2x256xf32>
    %133 = arith.mulf %131, %132 : vector<2x256xf32>
    %134 = vector.extract_strided_slice %12 {offsets = [0, 16], sizes = [2, 1], strides = [1, 1]} : vector<2x18xf32> to vector<2x1xf32>
    %135 = vector.extract_strided_slice %133 {offsets = [0, 0], sizes = [1, 256], strides = [1, 1]} : vector<2x256xf32> to vector<1x256xf32>
    %136 = vector.broadcast %134 : vector<2x1xf32> to vector<2x256xf32>
    %137 = vector.broadcast %135 : vector<1x256xf32> to vector<2x256xf32>
    %138 = arith.mulf %136, %137 : vector<2x256xf32>
    %139 = arith.addf %130, %138 : vector<2x256xf32>
    %140 = vector.extract_strided_slice %12 {offsets = [0, 17], sizes = [2, 1], strides = [1, 1]} : vector<2x18xf32> to vector<2x1xf32>
    %141 = vector.extract_strided_slice %133 {offsets = [1, 0], sizes = [1, 256], strides = [1, 1]} : vector<2x256xf32> to vector<1x256xf32>
    %142 = vector.broadcast %140 : vector<2x1xf32> to vector<2x256xf32>
    %143 = vector.broadcast %141 : vector<1x256xf32> to vector<2x256xf32>
    %144 = arith.mulf %142, %143 : vector<2x256xf32>
    %145 = arith.addf %139, %144 : vector<2x256xf32>
    %c0_13 = arith.constant 0 : index
    %c0_14 = arith.constant 0 : index
    %146 = vector.load %arg4[%c0_13, %c0_14] : memref<2x1xf32, #tpu.memory_space<vmem>>, vector<2x1xf32>
    %147 = vector.broadcast %146 : vector<2x1xf32> to vector<2x256xf32>
    %148 = arith.addf %145, %147 : vector<2x256xf32>
    %149 = math.exp %148 : vector<2x256xf32>
    %150 = arith.mulf %2, %149 : vector<2x256xf32>
    %151 = arith.addf %150, %148 : vector<2x256xf32>
    %c0_15 = arith.constant 0 : index
    %c0_16 = arith.constant 0 : index
    %c0_17 = arith.constant 0 : index
    %152 = vector.load %arg7[%c0_15, %c0_16, %c0_17] : memref<1x4x256xf32, #tpu.memory_space<vmem>>, vector<1x2x256xf32>
    %153 = vector.shape_cast %152 : vector<1x2x256xf32> to vector<2x256xf32>
    %154 = vector.shape_cast %151 : vector<2x256xf32> to vector<1x2x256xf32>
    tpu.vector_store %arg7[%c0_15, %c0_16, %c0_17], %154 {strides = array<i32>} : memref<1x4x256xf32, #tpu.memory_space<vmem>>, vector<1x2x256xf32>,
    %c0_18 = arith.constant 0 : index
    %c0_19 = arith.constant 0 : index
    %155 = vector.load %arg5[%c0_18, %c0_19] : memref<2x18xf32, #tpu.memory_space<vmem>>, vector<2x18xf32>
    %cst_20 = arith.constant 0.000000e+00 : f32
    %156 = vector.broadcast %cst_20 : f32 to vector<2x256xf32>
    %c17_i32_21 = arith.constant 17 : i32
    %157 = tpu.dynamic_rotate %151 by %c17_i32_21 dim 1 : vector<2x256xf32>, i32 -> vector<2x256xf32>
    %158 = vector.broadcast %4 : vector<1x256xf32> to vector<2x256xf32>
    %159 = arith.mulf %157, %158 : vector<2x256xf32>
    %160 = vector.extract_strided_slice %155 {offsets = [0, 0], sizes = [2, 1], strides = [1, 1]} : vector<2x18xf32> to vector<2x1xf32>
    %161 = vector.extract_strided_slice %159 {offsets = [0, 0], sizes = [1, 256], strides = [1, 1]} : vector<2x256xf32> to vector<1x256xf32>
    %162 = vector.broadcast %160 : vector<2x1xf32> to vector<2x256xf32>
    %163 = vector.broadcast %161 : vector<1x256xf32> to vector<2x256xf32>
    %164 = arith.mulf %162, %163 : vector<2x256xf32>
    %165 = arith.addf %156, %164 : vector<2x256xf32>
    %166 = vector.extract_strided_slice %155 {offsets = [0, 1], sizes = [2, 1], strides = [1, 1]} : vector<2x18xf32> to vector<2x1xf32>
    %167 = vector.extract_strided_slice %159 {offsets = [1, 0], sizes = [1, 256], strides = [1, 1]} : vector<2x256xf32> to vector<1x256xf32>
    %168 = vector.broadcast %166 : vector<2x1xf32> to vector<2x256xf32>
    %169 = vector.broadcast %167 : vector<1x256xf32> to vector<2x256xf32>
    %170 = arith.mulf %168, %169 : vector<2x256xf32>
    %171 = arith.addf %165, %170 : vector<2x256xf32>
    %c16_i32_22 = arith.constant 16 : i32
    %172 = tpu.dynamic_rotate %151 by %c16_i32_22 dim 1 : vector<2x256xf32>, i32 -> vector<2x256xf32>
    %173 = vector.broadcast %5 : vector<1x256xf32> to vector<2x256xf32>
    %174 = arith.mulf %172, %173 : vector<2x256xf32>
    %175 = vector.extract_strided_slice %155 {offsets = [0, 2], sizes = [2, 1], strides = [1, 1]} : vector<2x18xf32> to vector<2x1xf32>
    %176 = vector.extract_strided_slice %174 {offsets = [0, 0], sizes = [1, 256], strides = [1, 1]} : vector<2x256xf32> to vector<1x256xf32>
    %177 = vector.broadcast %175 : vector<2x1xf32> to vector<2x256xf32>
    %178 = vector.broadcast %176 : vector<1x256xf32> to vector<2x256xf32>
    %179 = arith.mulf %177, %178 : vector<2x256xf32>
    %180 = arith.addf %171, %179 : vector<2x256xf32>
    %181 = vector.extract_strided_slice %155 {offsets = [0, 3], sizes = [2, 1], strides = [1, 1]} : vector<2x18xf32> to vector<2x1xf32>
    %182 = vector.extract_strided_slice %174 {offsets = [1, 0], sizes = [1, 256], strides = [1, 1]} : vector<2x256xf32> to vector<1x256xf32>
    %183 = vector.broadcast %181 : vector<2x1xf32> to vector<2x256xf32>
    %184 = vector.broadcast %182 : vector<1x256xf32> to vector<2x256xf32>
    %185 = arith.mulf %183, %184 : vector<2x256xf32>
    %186 = arith.addf %180, %185 : vector<2x256xf32>
    %c15_i32_23 = arith.constant 15 : i32
    %187 = tpu.dynamic_rotate %151 by %c15_i32_23 dim 1 : vector<2x256xf32>, i32 -> vector<2x256xf32>
    %188 = vector.broadcast %6 : vector<1x256xf32> to vector<2x256xf32>
    %189 = arith.mulf %187, %188 : vector<2x256xf32>
    %190 = vector.extract_strided_slice %155 {offsets = [0, 4], sizes = [2, 1], strides = [1, 1]} : vector<2x18xf32> to vector<2x1xf32>
    %191 = vector.extract_strided_slice %189 {offsets = [0, 0], sizes = [1, 256], strides = [1, 1]} : vector<2x256xf32> to vector<1x256xf32>
    %192 = vector.broadcast %190 : vector<2x1xf32> to vector<2x256xf32>
    %193 = vector.broadcast %191 : vector<1x256xf32> to vector<2x256xf32>
    %194 = arith.mulf %192, %193 : vector<2x256xf32>
    %195 = arith.addf %186, %194 : vector<2x256xf32>
    %196 = vector.extract_strided_slice %155 {offsets = [0, 5], sizes = [2, 1], strides = [1, 1]} : vector<2x18xf32> to vector<2x1xf32>
    %197 = vector.extract_strided_slice %189 {offsets = [1, 0], sizes = [1, 256], strides = [1, 1]} : vector<2x256xf32> to vector<1x256xf32>
    %198 = vector.broadcast %196 : vector<2x1xf32> to vector<2x256xf32>
    %199 = vector.broadcast %197 : vector<1x256xf32> to vector<2x256xf32>
    %200 = arith.mulf %198, %199 : vector<2x256xf32>
    %201 = arith.addf %195, %200 : vector<2x256xf32>
    %c1_i32_24 = arith.constant 1 : i32
    %202 = tpu.dynamic_rotate %151 by %c1_i32_24 dim 1 : vector<2x256xf32>, i32 -> vector<2x256xf32>
    %203 = vector.broadcast %7 : vector<1x256xf32> to vector<2x256xf32>
    %204 = arith.mulf %202, %203 : vector<2x256xf32>
    %205 = vector.extract_strided_slice %155 {offsets = [0, 6], sizes = [2, 1], strides = [1, 1]} : vector<2x18xf32> to vector<2x1xf32>
    %206 = vector.extract_strided_slice %204 {offsets = [0, 0], sizes = [1, 256], strides = [1, 1]} : vector<2x256xf32> to vector<1x256xf32>
    %207 = vector.broadcast %205 : vector<2x1xf32> to vector<2x256xf32>
    %208 = vector.broadcast %206 : vector<1x256xf32> to vector<2x256xf32>
    %209 = arith.mulf %207, %208 : vector<2x256xf32>
    %210 = arith.addf %201, %209 : vector<2x256xf32>
    %211 = vector.extract_strided_slice %155 {offsets = [0, 7], sizes = [2, 1], strides = [1, 1]} : vector<2x18xf32> to vector<2x1xf32>
    %212 = vector.extract_strided_slice %204 {offsets = [1, 0], sizes = [1, 256], strides = [1, 1]} : vector<2x256xf32> to vector<1x256xf32>
    %213 = vector.broadcast %211 : vector<2x1xf32> to vector<2x256xf32>
    %214 = vector.broadcast %212 : vector<1x256xf32> to vector<2x256xf32>
    %215 = arith.mulf %213, %214 : vector<2x256xf32>
    %216 = arith.addf %210, %215 : vector<2x256xf32>
    %217 = vector.extract_strided_slice %155 {offsets = [0, 8], sizes = [2, 1], strides = [1, 1]} : vector<2x18xf32> to vector<2x1xf32>
    %218 = vector.extract_strided_slice %151 {offsets = [0, 0], sizes = [1, 256], strides = [1, 1]} : vector<2x256xf32> to vector<1x256xf32>
    %219 = vector.broadcast %217 : vector<2x1xf32> to vector<2x256xf32>
    %220 = vector.broadcast %218 : vector<1x256xf32> to vector<2x256xf32>
    %221 = arith.mulf %219, %220 : vector<2x256xf32>
    %222 = arith.addf %216, %221 : vector<2x256xf32>
    %223 = vector.extract_strided_slice %155 {offsets = [0, 9], sizes = [2, 1], strides = [1, 1]} : vector<2x18xf32> to vector<2x1xf32>
    %224 = vector.extract_strided_slice %151 {offsets = [1, 0], sizes = [1, 256], strides = [1, 1]} : vector<2x256xf32> to vector<1x256xf32>
    %225 = vector.broadcast %223 : vector<2x1xf32> to vector<2x256xf32>
    %226 = vector.broadcast %224 : vector<1x256xf32> to vector<2x256xf32>
    %227 = arith.mulf %225, %226 : vector<2x256xf32>
    %228 = arith.addf %222, %227 : vector<2x256xf32>
    %c255_i32_25 = arith.constant 255 : i32
    %229 = tpu.dynamic_rotate %151 by %c255_i32_25 dim 1 : vector<2x256xf32>, i32 -> vector<2x256xf32>
    %230 = vector.broadcast %8 : vector<1x256xf32> to vector<2x256xf32>
    %231 = arith.mulf %229, %230 : vector<2x256xf32>
    %232 = vector.extract_strided_slice %155 {offsets = [0, 10], sizes = [2, 1], strides = [1, 1]} : vector<2x18xf32> to vector<2x1xf32>
    %233 = vector.extract_strided_slice %231 {offsets = [0, 0], sizes = [1, 256], strides = [1, 1]} : vector<2x256xf32> to vector<1x256xf32>
    %234 = vector.broadcast %232 : vector<2x1xf32> to vector<2x256xf32>
    %235 = vector.broadcast %233 : vector<1x256xf32> to vector<2x256xf32>
    %236 = arith.mulf %234, %235 : vector<2x256xf32>
    %237 = arith.addf %228, %236 : vector<2x256xf32>
    %238 = vector.extract_strided_slice %155 {offsets = [0, 11], sizes = [2, 1], strides = [1, 1]} : vector<2x18xf32> to vector<2x1xf32>
    %239 = vector.extract_strided_slice %231 {offsets = [1, 0], sizes = [1, 256], strides = [1, 1]} : vector<2x256xf32> to vector<1x256xf32>
    %240 = vector.broadcast %238 : vector<2x1xf32> to vector<2x256xf32>
    %241 = vector.broadcast %239 : vector<1x256xf32> to vector<2x256xf32>
    %242 = arith.mulf %240, %241 : vector<2x256xf32>
    %243 = arith.addf %237, %242 : vector<2x256xf32>
    %c241_i32_26 = arith.constant 241 : i32
    %244 = tpu.dynamic_rotate %151 by %c241_i32_26 dim 1 : vector<2x256xf32>, i32 -> vector<2x256xf32>
    %245 = vector.broadcast %9 : vector<1x256xf32> to vector<2x256xf32>
    %246 = arith.mulf %244, %245 : vector<2x256xf32>
    %247 = vector.extract_strided_slice %155 {offsets = [0, 12], sizes = [2, 1], strides = [1, 1]} : vector<2x18xf32> to vector<2x1xf32>
    %248 = vector.extract_strided_slice %246 {offsets = [0, 0], sizes = [1, 256], strides = [1, 1]} : vector<2x256xf32> to vector<1x256xf32>
    %249 = vector.broadcast %247 : vector<2x1xf32> to vector<2x256xf32>
    %250 = vector.broadcast %248 : vector<1x256xf32> to vector<2x256xf32>
    %251 = arith.mulf %249, %250 : vector<2x256xf32>
    %252 = arith.addf %243, %251 : vector<2x256xf32>
    %253 = vector.extract_strided_slice %155 {offsets = [0, 13], sizes = [2, 1], strides = [1, 1]} : vector<2x18xf32> to vector<2x1xf32>
    %254 = vector.extract_strided_slice %246 {offsets = [1, 0], sizes = [1, 256], strides = [1, 1]} : vector<2x256xf32> to vector<1x256xf32>
    %255 = vector.broadcast %253 : vector<2x1xf32> to vector<2x256xf32>
    %256 = vector.broadcast %254 : vector<1x256xf32> to vector<2x256xf32>
    %257 = arith.mulf %255, %256 : vector<2x256xf32>
    %258 = arith.addf %252, %257 : vector<2x256xf32>
    %c240_i32_27 = arith.constant 240 : i32
    %259 = tpu.dynamic_rotate %151 by %c240_i32_27 dim 1 : vector<2x256xf32>, i32 -> vector<2x256xf32>
    %260 = vector.broadcast %10 : vector<1x256xf32> to vector<2x256xf32>
    %261 = arith.mulf %259, %260 : vector<2x256xf32>
    %262 = vector.extract_strided_slice %155 {offsets = [0, 14], sizes = [2, 1], strides = [1, 1]} : vector<2x18xf32> to vector<2x1xf32>
    %263 = vector.extract_strided_slice %261 {offsets = [0, 0], sizes = [1, 256], strides = [1, 1]} : vector<2x256xf32> to vector<1x256xf32>
    %264 = vector.broadcast %262 : vector<2x1xf32> to vector<2x256xf32>
    %265 = vector.broadcast %263 : vector<1x256xf32> to vector<2x256xf32>
    %266 = arith.mulf %264, %265 : vector<2x256xf32>
    %267 = arith.addf %258, %266 : vector<2x256xf32>
    %268 = vector.extract_strided_slice %155 {offsets = [0, 15], sizes = [2, 1], strides = [1, 1]} : vector<2x18xf32> to vector<2x1xf32>
    %269 = vector.extract_strided_slice %261 {offsets = [1, 0], sizes = [1, 256], strides = [1, 1]} : vector<2x256xf32> to vector<1x256xf32>
    %270 = vector.broadcast %268 : vector<2x1xf32> to vector<2x256xf32>
    %271 = vector.broadcast %269 : vector<1x256xf32> to vector<2x256xf32>
    %272 = arith.mulf %270, %271 : vector<2x256xf32>
    %273 = arith.addf %267, %272 : vector<2x256xf32>
    %c239_i32_28 = arith.constant 239 : i32
    %274 = tpu.dynamic_rotate %151 by %c239_i32_28 dim 1 : vector<2x256xf32>, i32 -> vector<2x256xf32>
    %275 = vector.broadcast %11 : vector<1x256xf32> to vector<2x256xf32>
    %276 = arith.mulf %274, %275 : vector<2x256xf32>
    %277 = vector.extract_strided_slice %155 {offsets = [0, 16], sizes = [2, 1], strides = [1, 1]} : vector<2x18xf32> to vector<2x1xf32>
    %278 = vector.extract_strided_slice %276 {offsets = [0, 0], sizes = [1, 256], strides = [1, 1]} : vector<2x256xf32> to vector<1x256xf32>
    %279 = vector.broadcast %277 : vector<2x1xf32> to vector<2x256xf32>
    %280 = vector.broadcast %278 : vector<1x256xf32> to vector<2x256xf32>
    %281 = arith.mulf %279, %280 : vector<2x256xf32>
    %282 = arith.addf %273, %281 : vector<2x256xf32>
    %283 = vector.extract_strided_slice %155 {offsets = [0, 17], sizes = [2, 1], strides = [1, 1]} : vector<2x18xf32> to vector<2x1xf32>
    %284 = vector.extract_strided_slice %276 {offsets = [1, 0], sizes = [1, 256], strides = [1, 1]} : vector<2x256xf32> to vector<1x256xf32>
    %285 = vector.broadcast %283 : vector<2x1xf32> to vector<2x256xf32>
    %286 = vector.broadcast %284 : vector<1x256xf32> to vector<2x256xf32>
    %287 = arith.mulf %285, %286 : vector<2x256xf32>
    %288 = arith.addf %282, %287 : vector<2x256xf32>
    %c0_29 = arith.constant 0 : index
    %c0_30 = arith.constant 0 : index
    %289 = vector.load %arg6[%c0_29, %c0_30] : memref<2x1xf32, #tpu.memory_space<vmem>>, vector<2x1xf32>
    %290 = vector.broadcast %289 : vector<2x1xf32> to vector<2x256xf32>
    %291 = arith.addf %288, %290 : vector<2x256xf32>
    %292 = math.exp %291 : vector<2x256xf32>
    %293 = arith.mulf %3, %292 : vector<2x256xf32>
    %294 = arith.addf %293, %291 : vector<2x256xf32>
    %c0_31 = arith.constant 0 : index
    %c2_32 = arith.constant 2 : index
    %c0_33 = arith.constant 0 : index
    %295 = vector.load %arg7[%c0_31, %c2_32, %c0_33] : memref<1x4x256xf32, #tpu.memory_space<vmem>>, vector<1x2x256xf32>
    %296 = vector.shape_cast %295 : vector<1x2x256xf32> to vector<2x256xf32>
    %297 = vector.shape_cast %294 : vector<2x256xf32> to vector<1x2x256xf32>
    tpu.vector_store %arg7[%c0_31, %c2_32, %c0_33], %297 {strides = array<i32>} : memref<1x4x256xf32, #tpu.memory_space<vmem>>, vector<1x2x256xf32>,
    return
  }
  func.func @transform_0(%arg0: i32) -> (i32, i32, i32) {
    %c0_i32 = arith.constant 0 : i32
    %c0_i32_0 = arith.constant 0 : i32
    %c0_i32_1 = arith.constant 0 : i32
    return %arg0, %c0_i32, %c0_i32_0 : i32, i32, i32
  }
  func.func @transform_1(%arg0: i32) -> (i32, i32) {
    %c0_i32 = arith.constant 0 : i32
    %c0_i32_0 = arith.constant 0 : i32
    %c0_i32_1 = arith.constant 0 : i32
    return %c0_i32, %c0_i32_0 : i32, i32
  }
  func.func @transform_2(%arg0: i32) -> (i32, i32) {
    %c0_i32 = arith.constant 0 : i32
    %c0_i32_0 = arith.constant 0 : i32
    %c0_i32_1 = arith.constant 0 : i32
    return %c0_i32, %c0_i32_0 : i32, i32
  }
  func.func @transform_3(%arg0: i32) -> (i32, i32) {
    %c0_i32 = arith.constant 0 : i32
    %c0_i32_0 = arith.constant 0 : i32
    %c0_i32_1 = arith.constant 0 : i32
    return %c0_i32, %c0_i32_0 : i32, i32
  }
  func.func @transform_4(%arg0: i32) -> (i32, i32) {
    %c0_i32 = arith.constant 0 : i32
    %c0_i32_0 = arith.constant 0 : i32
    %c0_i32_1 = arith.constant 0 : i32
    return %c0_i32, %c0_i32_0 : i32, i32
  }
  func.func @transform_5(%arg0: i32) -> (i32, i32) {
    %c0_i32 = arith.constant 0 : i32
    %c0_i32_0 = arith.constant 0 : i32
    %c0_i32_1 = arith.constant 0 : i32
    return %c0_i32, %c0_i32_0 : i32, i32
  }
  func.func @transform_6(%arg0: i32) -> (i32, i32, i32) {
    %c0_i32 = arith.constant 0 : i32
    %c0_i32_0 = arith.constant 0 : i32
    %c0_i32_1 = arith.constant 0 : i32
    return %arg0, %c0_i32, %c0_i32_0 : i32, i32, i32
  }
}

</mosaic_0001>

<bundles_post_ra>
// kernel: affine_block_forward.1
= control target key start
LH: loop header
LB: loop body
LE: loop exit
PB: predicated region body
PF: predicated region fallthrough
CT: control target
= control target key end

     0   :  { %s1397_s21 = smov 0   ;;  %s1912_s0 = inlined_call_operand.vmem [shape: f32[2,4,256], index: 0, kind: input, shape index: {}]   ;;  %s1913_s1 = inlined_call_operand.vmem [shape: f32[9,256], index: 1, kind: input, shape index: {}]   ;;  %s1914_s2 = inlined_call_operand.vmem [shape: f32[2,18], index: 2, kind: input, shape index: {}]   ;;  %s1915_s3 = inlined_call_operand.vmem [shape: f32[2,1], index: 3, kind: input, shape index: {}]   ;;  %s1916_s4 = inlined_call_operand.vmem [shape: f32[2,18], index: 4, kind: input, shape index: {}]   ;;  %s1917_s5 = inlined_call_operand.vmem [shape: f32[2,1], index: 5, kind: input, shape index: {}]   ;;  %s1918_s6 = inlined_call_operand.vmem [shape: f32[2,4,256], index: 6, kind: output, shape index: {}]  }
   0x1 LB: > { %s1226_s22 = sadd.s32 4294967295, %s1334_s21   ;;  %p1230_p0 = scmp.ge.s32.totalorder %s1334_s21, 1  ;;  %s1334_s21 = sphi %s1397_s21, %s16_s21  }
   0x2   : > { %p212_p1 = scmp.lt.s32.totalorder %s1334_s21, 3 }
   0x4   : > { %p213_p2 = pnand %p1230_p0, %p212_p1 }
   0x5   : > { %v1408_v0 = vld [vmem:[%s1914_s2] sm:$0x3] (!%p213_p2)  ;;  %p242_p3 = scmp.lt.s32.totalorder (!%p213_p2), %s1226_s22, 1  ;;  %v1336_v1 = vmov (!%p213_p2), 2   ;;  %v1337_v2 = vmov (!%p213_p2), 0   ;;  %v1338_v3 = vmov (!%p213_p2), 1   ;;  %v279_v29 = vlaneseq (!%p213_p2) }
   0x6   : > { %216 = sbr.rel (%p213_p2) target bundleno = 469 (0x1d5), region = 44  ;;  %1282 = vset.pattern.permute.xlu1 (!%p213_p2), %v1336_v1  ;;  %1280 = vset.pattern.permute.xlu0 (!%p213_p2), %v1337_v2  ;;  %v1339_v5 = vmov (!%p213_p2), 4   ;;  %s1340_s29 = smov (!%p213_p2), 17   ;;  %v1342_v9 = vmov (!%p213_p2), 3   ;;  %v1344_v10 = vmov (!%p213_p2), 6   ;;  %v1345_v11 = vmov (!%p213_p2), 5  }
   0x7   : > { %351 = vperm.xlu1 (!%p213_p2), %1282, %v1408_v0   ;;  %299 = vperm.xlu0 (!%p213_p2), %1280, %v1408_v0   ;;  %s1341_s30 = smov (!%p213_p2), 16   ;;  %s1343_s7 = smov (!%p213_p2), 15   ;;  %v1346_v12 = vmov (!%p213_p2), 7   ;;  %v1347_v13 = vmov (!%p213_p2), 10   ;;  %v1349_v14 = vmov (!%p213_p2), 8   ;;  %v1350_v15 = vmov (!%p213_p2), 11  }
   0x8   : > { %s1348_s8 = smov (!%p213_p2), 1   ;;  %s1351_s9 = smov (!%p213_p2), 113   ;;  %v1352_v16 = vmov (!%p213_p2), 14   ;;  %v1353_v17 = vmov (!%p213_p2), 9   ;;  %v1355_v18 = vmov (!%p213_p2), 15   ;;  %v1356_v19 = vmov (!%p213_p2), 12  }
   0x9   : > { %s1354_s10 = smov (!%p213_p2), 127   ;;  %s1357_s11 = smov (!%p213_p2), 111   ;;  %v746_v20 = vld [vmem:[%s1915_s3] sm:$0x3] (!%p213_p2)  ;;  %v1358_v21 = vmov (!%p213_p2), 13   ;;  %v1360_v23 = vmov (!%p213_p2), 16  }
   0xa   : > { %v1485_v22 = vld [vmem:[%s1916_s4] sm:$0x3] (!%p213_p2)  ;;  %s1359_s16 = smov (!%p213_p2), 112   ;;  %v1361_v24 = vmov (!%p213_p2), 17   ;;  %v1515_v31 = vshrl.u32 (!%p213_p2), %v279_v29, 7  ;;  %v1517_v33 = vand.u32 (!%p213_p2), 127, %v279_v29 }
   0xb   : > { %1281 = vset.pattern.permute.xlu0 (!%p213_p2), %v1338_v3  ;;  %1284 = vset.pattern.permute.xlu1 (!%p213_p2), %v1339_v5  ;;  %v253_v37 = vld [vmem:[%s1913_s1] ss:$8 sm:$0x3] (!%p213_p2)  ;;  %v1235_v41 = vld [vmem:[%s1913_s1 + $0x1] ss:$8 sm:$0x3] (!%p213_p2) }
   0xc   : > { %315 = vperm.xlu0 (!%p213_p2), %1281, %v1408_v0   ;;  %v1520_v34 = vsub.s32 (!%p213_p2), 0, %v1515_v31  ;;  %v1523_v35 = vsub.s32 (!%p213_p2), 1, %v1515_v31  ;;  %vm281_vm0 = vcmp.lt.s32.totalorder (!%p213_p2), %v1517_v33, 17  ;;  %vm334_vm1 = vcmp.lt.s32.totalorder (!%p213_p2), %v1517_v33, 16 }
   0xd   : > { %s1920_s22 = smov (!%p242_p3, %s1226_s22), 1  ;;  %v1236_v55 = vld [vmem:[%s1913_s1 + $0x2] ss:$8 sm:$0x3]  ;;  %vm386_vm2 = vcmp.lt.s32.totalorder %v1517_v33, 15  ;;  %vm438_vm3 = vcmp.lt.s32.totalorder %v1517_v33, 1 }
   0xe   : > { %s1244_s25 = sshll.u32 %s1920_s22, 3  ;;  %v1532_v39 = vrot.slane %v253_v37, %v1520_v34  ;;  %v1535_v40 = vrot.slane %v253_v37, %v1523_v35  ;;  %v1546_v45 = vrot.slane %v1235_v41, %v1520_v34  ;;  %v1549_v46 = vrot.slane %v1235_v41, %v1523_v35 }
   0xf   : > { %s1422_s28 = scalar_lea.vmem %s1912_s0, %s1244_s25  ;;  %v1570_v62 = vrot.slane %v1236_v55, %v1520_v34  ;;  %v1573_v63 = vrot.slane %v1236_v55, %v1523_v35  ;;  %vm542_vm4 = vcmp.lt.s32.totalorder %v1517_v33, 127  ;;  %vm594_vm5 = vcmp.lt.s32.totalorder %v1517_v33, 113  ;;  %s1715_s26 = scalar_lea.vmem %s1918_s6, %s1244_s25 }
  0x10   : > { %v1426_v4 = vld [vmem:[%s1422_s28] sm:$0xff]  ;;  %1283 = vset.pattern.permute.xlu0 %v1342_v9  ;;  %vm646_vm6 = vcmp.lt.s32.totalorder %v1517_v33, 112  ;;  %vm698_vm7 = vcmp.lt.s32.totalorder %v1517_v33, 111 }
  0x11   : > { %v1430_v6 = vrot.slane %v1426_v4, 2  ;;  %v270_v7 = vcombine.high %v1426_v4, %v1426_v4 }
  0x13   : > { %275 = vrot.lane.b32.xlu1 %v1430_v6, %s1340_s29  ;;  %v1437_v8 = vrot.slane %v270_v7, 2  ;;  %330 = vrot.lane.b32.xlu0 %v1430_v6, %s1341_s30 }
  0x17   : > { %277 = vrot.lane.b32.xlu1 %v1437_v8, %s1340_s29  ;;  %367 = vperm.xlu0 %1283, %v1408_v0  }
  0x1b   : > { %332 = vrot.lane.b32.xlu1 %v1437_v8, %s1341_s30  ;;  %384 = vrot.lane.b32.xlu0 %v1437_v8, %s1343_s7 }
  0x1c   : > { %1286 = vset.pattern.permute.xlu0 %v1344_v10 }
  0x1f   : > { %403 = vperm.xlu1 %1284, %v1408_v0   ;;  %455 = vperm.xlu0 %1286, %v1408_v0  }
  0x23   : > { %382 = vrot.lane.b32.xlu1 %v1430_v6, %s1343_s7  ;;  %1287 = vset.pattern.permute.xlu0 %v1346_v12 }
  0x24   : > { %1285 = vset.pattern.permute.xlu1 %v1345_v11  ;;  %471 = vperm.xlu0 %1287, %v1408_v0  }
  0x27   : > { %419 = vperm.xlu1 %1285, %v1408_v0  }
  0x28   : > { %1290 = vset.pattern.permute.xlu0 %v1347_v13 }
  0x29   : > { %559 = vperm.xlu0 %1290, %v1408_v0  }
  0x2b   : > { %434 = vrot.lane.b32.xlu1 %v1430_v6, %s1348_s8 }
  0x2c   : > { %1288 = vset.pattern.permute.xlu1 %v1349_v14 }
  0x2d   : > { %1291 = vset.pattern.permute.xlu0 %v1350_v15 }
  0x2e   : > { %575 = vperm.xlu0 %1291, %v1408_v0  }
  0x2f   : > { %436 = vrot.lane.b32.xlu1 %v1437_v8, %s1348_s8 }
  0x32   : > { %592 = vrot.lane.b32.xlu0 %v1437_v8, %s1351_s9 }
  0x33   : > { %487 = vperm.xlu1 %1288, %v1408_v0   ;;  %1294 = vset.pattern.permute.xlu0 %v1352_v16 }
  0x36   : > { %663 = vperm.xlu0 %1294, %v1408_v0  }
  0x37   : > { %1289 = vset.pattern.permute.xlu1 %v1353_v17 }
  0x38   : > { %513 = vperm.xlu1 %1289, %v1408_v0  }
  0x3a   : > { %1295 = vset.pattern.permute.xlu0 %v1355_v18 }
  0x3b   : > { %679 = vperm.xlu0 %1295, %v1408_v0  }
  0x3c   : > { %538 = vrot.lane.b32.xlu1 %v1430_v6, %s1354_s10 }
  0x3d   : > { %1292 = vset.pattern.permute.xlu1 %v1356_v19 }
  0x3f   : > { %696 = vrot.lane.b32.xlu0 %v1437_v8, %s1357_s11 }
  0x40   : > { %540 = vrot.lane.b32.xlu1 %v1437_v8, %s1354_s10  ;;  %1298 = vset.pattern.permute.xlu0 %v1337_v2 }
  0x43   : > { %749 = vperm.xlu0 %1298, %v746_v20  }
  0x44   : > { %611 = vperm.xlu1 %1292, %v1408_v0  }
  0x47   : > { %1301 = vset.pattern.permute.xlu0 %v1336_v1 }
  0x48   : > { %590 = vrot.lane.b32.xlu1 %v1430_v6, %s1351_s9  ;;  %823 = vperm.xlu0 %1301, %v1485_v22  }
  0x49   : > { %1293 = vset.pattern.permute.xlu1 %v1358_v21 }
  0x4c   : > { %627 = vperm.xlu1 %1293, %v1408_v0   ;;  %1302 = vset.pattern.permute.xlu0 %v1342_v9 }
  0x4d   : > { %839 = vperm.xlu0 %1302, %v1485_v22  }
  0x50   : > { %642 = vrot.lane.b32.xlu1 %v1430_v6, %s1359_s16 }
  0x51   : > { %1296 = vset.pattern.permute.xlu1 %v1360_v23  ;;  %1305 = vset.pattern.permute.xlu0 %v1344_v10 }
  0x52   : > { %903 = vperm.xlu0 %1305, %v1485_v22  }
  0x54   : > { %644 = vrot.lane.b32.xlu1 %v1437_v8, %s1359_s16 }
  0x56   : > { %1306 = vset.pattern.permute.xlu0 %v1346_v12 }
  0x57   : > { %919 = vperm.xlu0 %1306, %v1485_v22  }
  0x58   : > { %715 = vperm.xlu1 %1296, %v1408_v0  }
  0x5b   : > { %1309 = vset.pattern.permute.xlu0 %v1347_v13 }
  0x5c   : > { %694 = vrot.lane.b32.xlu1 %v1430_v6, %s1357_s11  ;;  %995 = vperm.xlu0 %1309, %v1485_v22  }
  0x5d   : > { %1297 = vset.pattern.permute.xlu1 %v1361_v24 }
  0x60   : > { %731 = vperm.xlu1 %1297, %v1408_v0   ;;  %1310 = vset.pattern.permute.xlu0 %v1350_v15 }
  0x64   : > { %1299 = vset.pattern.permute.xlu1 %v1337_v2 }
  0x65   : > { %783 = vperm.xlu1 %1299, %v1485_v22  }
  0x69   : > { %1300 = vset.pattern.permute.xlu1 %v1338_v3 }
  0x6a   : > { %799 = vperm.xlu1 %1300, %v1485_v22  }
  0x6e   : > { %1303 = vset.pattern.permute.xlu1 %v1339_v5 }
  0x6f   : > { %863 = vperm.xlu1 %1303, %v1485_v22  }
  0x73   : > { %1304 = vset.pattern.permute.xlu1 %v1345_v11  ;;  %v1237_v11 = vld [vmem:[%s1913_s1 + $0x3] ss:$8 sm:$0x3] }
  0x74   : > { %879 = vperm.xlu1 %1304, %v1485_v22  }
  0x78   : > { %1307 = vset.pattern.permute.xlu1 %v1349_v14 }
  0x79   : > { %935 = vperm.xlu1 %1307, %v1485_v22  }
  0x7d   : > { %1308 = vset.pattern.permute.xlu1 %v1353_v17 }
  0x7e   : > { %961 = vperm.xlu1 %1308, %v1485_v22  }
  0x82   : > { %1311 = vset.pattern.permute.xlu1 %v1356_v19 }
  0x83   : > { %1035 = vperm.xlu1 %1311, %v1485_v22  }
  0x86   : > { %v352_v25 = vpop.permute.xlu1 %351  ;;  %v300_v27 = vpop.permute.xlu0 %299 }
  0x87   : > { %1312 = vset.pattern.permute.xlu1 %v1358_v21  ;;  %v1588_v21 = vrot.slane %v1237_v11, %v1520_v34 }
  0x88   : > { %1051 = vperm.xlu1 %1312, %v1485_v22  }
  0x8a   : > { %v276_v26 = vpop.permute.xlu1 %275 }
  0x8b   : > { %v316_v30 = vpop.permute.xlu0 %315 }
  0x8c   : > { %1315 = vset.pattern.permute.xlu1 %v1360_v23  ;;  %v1591_v23 = vrot.slane %v1237_v11, %v1523_v35 }
  0x8e   : > { %v278_v28 = vpop.permute.xlu1 %277 }
  0x8f   : > { %v331_v38 = vpop.permute.xlu0 %330  ;;  %v282_v43 = vsel %vm281_vm0, %v276_v26, %v278_v28  ;;  %v283_v44 = vsel %vm281_vm0, %v278_v28, %v276_v26 }
  0x90   : > { %v295_v47 = vmul.f32 %v1532_v39, %v283_v44  ;;  %v296_v48 = vmul.f32 %v1535_v40, %v282_v43 }
  0x92   : > { %v333_v32 = vpop.permute.xlu1 %332  ;;  %v305_v56 = vrot.slane %v295_v47, %v1520_v34  ;;  %v309_v57 = vrot.slane %v296_v48, %v1520_v34  ;;  %v321_v58 = vrot.slane %v295_v47, %v1523_v35  ;;  %v325_v59 = vrot.slane %v296_v48, %v1523_v35 }
  0x93   : > { %v335_v49 = vsel %vm334_vm1, %v331_v38, %v333_v32  ;;  %v336_v50 = vsel %vm334_vm1, %v333_v32, %v331_v38 }
  0x94   : > { %v348_v53 = vmul.f32 %v1546_v45, %v336_v50  ;;  %v349_v54 = vmul.f32 %v1549_v46, %v335_v49  ;;  %v310_v6 = vmul.f32 %v305_v56, %v300_v27  ;;  %v311_v7 = vmul.f32 %v309_v57, %v300_v27 }
  0x95   : > { %v326_v8 = vmul.f32 %v321_v58, %v316_v30  ;;  %v327_v9 = vmul.f32 %v325_v59, %v316_v30  ;;  %v492_v59 = vsub.s32 2, %v1515_v31 }
  0x96   : > { %v368_v51 = vpop.permute.xlu0 %367  ;;  %v357_v0 = vrot.slane %v348_v53, %v1520_v34  ;;  %v361_v1 = vrot.slane %v349_v54, %v1520_v34  ;;  %v373_v27 = vrot.slane %v348_v53, %v1523_v35  ;;  %v377_v28 = vrot.slane %v349_v54, %v1523_v35 }
  0x97   : > { %v328_v19 = vadd.f32 %v326_v8, %v310_v6  ;;  %v329_v20 = vadd.f32 %v327_v9, %v311_v7 }
  0x98   : > { %v362_v14 = vmul.f32 %v357_v0, %v352_v25  ;;  %v363_v15 = vmul.f32 %v361_v1, %v352_v25  ;;  %v378_v43 = vmul.f32 %v373_v27, %v368_v51  ;;  %v379_v44 = vmul.f32 %v377_v28, %v368_v51 }
  0x99   : > { %v496_v51 = vsub.s32 6, %v1515_v31 }
  0x9a   : > { %v385_v60 = vpop.permute.xlu0 %384  ;;  %v364_v37 = vadd.f32 %v362_v14, %v328_v19  ;;  %v365_v38 = vadd.f32 %v363_v15, %v329_v20 }
  0x9b   : > { %v497_v11 = vrot.slane %v1426_v4, %v496_v51 }
  0x9c   : > { %v380_v53 = vadd.f32 %v378_v43, %v364_v37  ;;  %v381_v54 = vadd.f32 %v379_v44, %v365_v38 }
  0x9d   : > { %v507_v38 = vrot.slane %v497_v11, %v492_v59 }
  0x9e   : > { %v1525_v36 = vpop.permute.xlu1 %403  ;;  %v456_v17 = vpop.permute.xlu0 %455 }
  0xa2   : > { %v383_v42 = vpop.permute.xlu1 %382 }
  0xa3   : > { %v387_v3 = vsel %vm386_vm2, %v383_v42, %v385_v60  ;;  %v388_v5 = vsel %vm386_vm2, %v385_v60, %v383_v42  ;;  %v472_v47 = vpop.permute.xlu0 %471 }
  0xa4   : > { %v400_v12 = vmul.f32 %v1570_v62, %v388_v5  ;;  %v401_v13 = vmul.f32 %v1573_v63, %v387_v3  ;;  %v518_v3 = vsub.s32 3, %v1515_v31  ;;  %v522_v5 = vsub.s32 7, %v1515_v31 }
  0xa6   : > { %v1557_v52 = vpop.permute.xlu1 %419  ;;  %v409_v30 = vrot.slane %v400_v12, %v1520_v34  ;;  %v413_v32 = vrot.slane %v401_v13, %v1520_v34  ;;  %v425_v55 = vrot.slane %v400_v12, %v1523_v35  ;;  %v429_v56 = vrot.slane %v401_v13, %v1523_v35 }
  0xa8   : > { %v414_v49 = vmul.f32 %v409_v30, %v1525_v36  ;;  %v415_v50 = vmul.f32 %v413_v32, %v1525_v36  ;;  %v560_v60 = vpop.permute.xlu0 %559  ;;  %v1238_v36 = vld [vmem:[%s1913_s1 + $0x5] ss:$8 sm:$0x3]  ;;  %v430_v6 = vmul.f32 %v425_v55, %v1557_v52  ;;  %v431_v7 = vmul.f32 %v429_v56, %v1557_v52 }
  0xa9   : > { %v1626_v12 = vrot.slane %v1238_v36, %v1520_v34  ;;  %v1629_v13 = vrot.slane %v1238_v36, %v1523_v35  ;;  %v519_v30 = vrot.slane %v1426_v4, %v518_v3  ;;  %v523_v32 = vrot.slane %v1426_v4, %v522_v5 }
  0xaa   : > { %v435_v61 = vpop.permute.xlu1 %434  ;;  %v416_v0 = vadd.f32 %v414_v49, %v380_v53  ;;  %v417_v1 = vadd.f32 %v415_v50, %v381_v54  ;;  %v1239_v50 = vld [vmem:[%s1913_s1 + $0x6] ss:$8 sm:$0x3] }
  0xab   : > { %v529_v55 = vrot.slane %v519_v30, %v518_v3  ;;  %v533_v56 = vrot.slane %v523_v32, %v518_v3  ;;  %v1651_v51 = vrot.slane %v1239_v50, %v1523_v35 }
  0xac   : > { %v432_v15 = vadd.f32 %v430_v6, %v416_v0  ;;  %v433_v19 = vadd.f32 %v431_v7, %v417_v1 }
  0xad   : > { %v576_v52 = vpop.permute.xlu0 %575 }
  0xae   : > { %v437_v10 = vpop.permute.xlu1 %436 }
  0xaf   : > { %v439_v29 = vsel %vm438_vm3, %v435_v61, %v437_v10  ;;  %v440_v25 = vsel %vm438_vm3, %v437_v10, %v435_v61  ;;  %v493_v10 = vrot.slane %v1426_v4, %v492_v59 }
  0xb0   : > { %v452_v41 = vmul.f32 %v1588_v21, %v440_v25  ;;  %v453_v42 = vmul.f32 %v1591_v23, %v439_v29 }
  0xb1   : > { %v503_v37 = vrot.slane %v493_v10, %v492_v59  ;;  %v593_v59 = vpop.permute.xlu0 %592 }
  0xb2   : > { %v1593_v26 = vpop.permute.xlu1 %487  ;;  %v461_v57 = vrot.slane %v452_v41, %v1520_v34  ;;  %v465_v58 = vrot.slane %v453_v42, %v1520_v34  ;;  %v477_v20 = vrot.slane %v452_v41, %v1523_v35  ;;  %v481_v27 = vrot.slane %v453_v42, %v1523_v35 }
  0xb4   : > { %v466_v8 = vmul.f32 %v461_v57, %v456_v17  ;;  %v467_v9 = vmul.f32 %v465_v58, %v456_v17  ;;  %v482_v44 = vmul.f32 %v477_v20, %v472_v47  ;;  %v483_v41 = vmul.f32 %v481_v27, %v472_v47 }
  0xb5   : > { %v508_v57 = vmul.f32 %v503_v37, %v1593_v26  ;;  %v509_v58 = vmul.f32 %v507_v38, %v1593_v26  ;;  %v1648_v47 = vrot.slane %v1239_v50, %v1520_v34 }
  0xb6   : > { %v468_v29 = vadd.f32 %v466_v8, %v432_v15  ;;  %v469_v25 = vadd.f32 %v467_v9, %v433_v19 }
  0xb7   : > { %v1605_v48 = vpop.permute.xlu1 %513 }
  0xb8   : > { %v484_v53 = vadd.f32 %v482_v44, %v468_v29  ;;  %v485_v54 = vadd.f32 %v483_v41, %v469_v25  ;;  %v534_v9 = vmul.f32 %v529_v55, %v1605_v48  ;;  %v535_v10 = vmul.f32 %v533_v56, %v1605_v48  ;;  %v664_v25 = vpop.permute.xlu0 %663 }
  0xba   : > { %v510_v5 = vadd.f32 %v508_v57, %v484_v53  ;;  %v511_v26 = vadd.f32 %v509_v58, %v485_v54 }
  0xbb   : > { %v539_v61 = vpop.permute.xlu1 %538 }
  0xbc   : > { %v536_v15 = vadd.f32 %v534_v9, %v510_v5  ;;  %v537_v19 = vadd.f32 %v535_v10, %v511_v26  ;;  %v680_v58 = vpop.permute.xlu0 %679 }
  0xbf   : > { %v541_v14 = vpop.permute.xlu1 %540 }
  0xc0   : > { %v543_v17 = vsel %vm542_vm4, %v539_v61, %v541_v14  ;;  %v544_v28 = vsel %vm542_vm4, %v541_v14, %v539_v61 }
  0xc1   : > { %v556_v42 = vmul.f32 %v1626_v12, %v543_v17  ;;  %v557_v49 = vmul.f32 %v1629_v13, %v544_v28  ;;  %v1240_v17 = vld [vmem:[%s1913_s1 + $0x7] ss:$8 sm:$0x3] }
  0xc2   : > { %v1675_v37 = vrot.slane %v1240_v17, %v1523_v35 }
  0xc3   : > { %v612_v43 = vpop.permute.xlu1 %611  ;;  %v565_v0 = vrot.slane %v556_v42, %v1520_v34  ;;  %v569_v1 = vrot.slane %v557_v49, %v1520_v34  ;;  %v581_v20 = vrot.slane %v556_v42, %v1523_v35  ;;  %v585_v27 = vrot.slane %v557_v49, %v1523_v35 }
  0xc5   : > { %v570_v11 = vmul.f32 %v565_v0, %v560_v60  ;;  %v571_v14 = vmul.f32 %v569_v1, %v560_v60  ;;  %v1672_v60 = vrot.slane %v1240_v17, %v1520_v34  ;;  %v586_v38 = vmul.f32 %v581_v20, %v576_v52  ;;  %v697_v20 = vpop.permute.xlu0 %696 }
  0xc6   : > { %v587_v44 = vmul.f32 %v585_v27, %v576_v52 }
  0xc7   : > { %v591_v61 = vpop.permute.xlu1 %590  ;;  %v572_v32 = vadd.f32 %v570_v11, %v536_v15  ;;  %v573_v48 = vadd.f32 %v571_v14, %v537_v19 }
  0xc8   : > { %v595_v36 = vsel %vm594_vm5, %v591_v61, %v593_v59  ;;  %v596_v3 = vsel %vm594_vm5, %v593_v59, %v591_v61 }
  0xc9   : > { %v608_v6 = vmul.f32 %v1648_v47, %v595_v36  ;;  %v609_v7 = vmul.f32 %v1651_v51, %v596_v3  ;;  %v588_v50 = vadd.f32 %v586_v38, %v572_v32  ;;  %v589_v53 = vadd.f32 %v587_v44, %v573_v48 }
  0xcb   : > { %v628_v8 = vpop.permute.xlu1 %627  ;;  %v617_v28 = vrot.slane %v608_v6, %v1520_v34  ;;  %v621_v29 = vrot.slane %v609_v7, %v1520_v34  ;;  %v633_v56 = vrot.slane %v608_v6, %v1523_v35  ;;  %v637_v57 = vrot.slane %v609_v7, %v1523_v35 }
  0xcd   : > { %v622_v41 = vmul.f32 %v617_v28, %v612_v43  ;;  %v623_v42 = vmul.f32 %v621_v29, %v612_v43  ;;  %v1241_v43 = vld [vmem:[%s1913_s1 + $0x10] ss:$8 sm:$0x3]  ;;  %v638_v6 = vmul.f32 %v633_v56, %v628_v8  ;;  %v639_v7 = vmul.f32 %v637_v57, %v628_v8 }
  0xce   : > { %v1692_v5 = vrot.slane %v1241_v43, %v1520_v34  ;;  %v1695_v26 = vrot.slane %v1241_v43, %v1523_v35  ;;  %v750_v43 = vpop.permute.xlu0 %749 }
  0xcf   : > { %v643_v30 = vpop.permute.xlu1 %642  ;;  %v624_v61 = vadd.f32 %v622_v41, %v588_v50  ;;  %v625_v0 = vadd.f32 %v623_v42, %v589_v53 }
  0xd1   : > { %v640_v15 = vadd.f32 %v638_v6, %v624_v61  ;;  %v641_v19 = vadd.f32 %v639_v7, %v625_v0 }
  0xd3   : > { %v645_v49 = vpop.permute.xlu1 %644 }
  0xd4   : > { %v647_v54 = vsel %vm646_vm6, %v643_v30, %v645_v49  ;;  %v648_v55 = vsel %vm646_vm6, %v645_v49, %v643_v30 }
  0xd5   : > { %v660_v59 = vmul.f32 %v1672_v60, %v647_v54  ;;  %v661_v52 = vmul.f32 %v1675_v37, %v648_v55 }
  0xd7   : > { %v669_v1 = vrot.slane %v660_v59, %v1520_v34  ;;  %v673_v36 = vrot.slane %v661_v52, %v1520_v34  ;;  %v716_v3 = vpop.permute.xlu1 %715  ;;  %v685_v11 = vrot.slane %v660_v59, %v1523_v35  ;;  %v689_v14 = vrot.slane %v661_v52, %v1523_v35 }
  0xd9   : > { %v674_v9 = vmul.f32 %v669_v1, %v664_v25  ;;  %v675_v10 = vmul.f32 %v673_v36, %v664_v25  ;;  %v690_v32 = vmul.f32 %v685_v11, %v680_v58  ;;  %v691_v48 = vmul.f32 %v689_v14, %v680_v58 }
  0xdb   : > { %v695_v27 = vpop.permute.xlu1 %694  ;;  %v676_v29 = vadd.f32 %v674_v9, %v640_v15  ;;  %v677_v30 = vadd.f32 %v675_v10, %v641_v19 }
  0xdc   : > { %v699_v17 = vsel %vm698_vm7, %v695_v27, %v697_v20  ;;  %v700_v28 = vsel %vm698_vm7, %v697_v20, %v695_v27  ;;  %v824_v27 = vpop.permute.xlu0 %823 }
  0xdd   : > { %v712_v8 = vmul.f32 %v1692_v5, %v699_v17  ;;  %v713_v25 = vmul.f32 %v1695_v26, %v700_v28  ;;  %v692_v54 = vadd.f32 %v690_v32, %v676_v29  ;;  %v693_v55 = vadd.f32 %v691_v48, %v677_v30 }
  0xdf   : > { %v721_v38 = vrot.slane %v712_v8, %v1520_v34  ;;  %v725_v44 = vrot.slane %v713_v25, %v1520_v34  ;;  %v737_v41 = vrot.slane %v712_v8, %v1523_v35  ;;  %v741_v42 = vrot.slane %v713_v25, %v1523_v35  ;;  %v732_v49 = vpop.permute.xlu1 %731 }
  0xe0   : > { %v840_v29 = vpop.permute.xlu0 %839 }
  0xe1   : > { %v726_v50 = vmul.f32 %v721_v38, %v716_v3  ;;  %v727_v53 = vmul.f32 %v725_v44, %v716_v3  ;;  %v742_v56 = vmul.f32 %v737_v41, %v732_v49  ;;  %v743_v57 = vmul.f32 %v741_v42, %v732_v49 }
  0xe3   : > { %v728_v59 = vadd.f32 %v726_v50, %v692_v54  ;;  %v729_v52 = vadd.f32 %v727_v53, %v693_v55 }
  0xe5   : > { %v744_v58 = vadd.f32 %v742_v56, %v728_v59  ;;  %v745_v61 = vadd.f32 %v743_v57, %v729_v52 }
  0xe7   : > { %v752_v0 = vadd.f32 %v750_v43, %v744_v58  ;;  %v753_v1 = vadd.f32 %v750_v43, %v745_v61 }
  0xe9   : > { %v754_v36 = vmul.f32 1.442695, %v752_v0  ;;  %v756_v6 = vmul.f32 1.442695, %v753_v1  ;;  %v765_v11 = vcombine.low %v752_v0, %v753_v1  ;;  %v944_v1 = vsub.s32 4, %v1515_v31 }
  0xeb   : > { %1319 = vpow2.f32 %v754_v36 }
  0xec   : > { %1321 = vpow2.f32 %v756_v6 }
  0xf5   : > { %v1320_v7 = vpop.eup %1319 }
  0xf6   : > { %v1322_v9 = vpop.eup %1321 }
  0xf7   : > { %v760_v10 = vcombine.low %v1320_v7, %v1322_v9 }
  0xf9   : > { %v762_v3 = vmul.f32 %v760_v10, %v1426_v4 }
  0xfb   : > { %v1717_v14 = vadd.f32 %v765_v11, %v762_v3 }
  0xfd   : > { %814 = vrot.lane.b32.xlu1 %v1717_v14, %s1341_s30  ;;  %773 = vrot.lane.b32.xlu0 %v1717_v14, %s1340_s29  ;;  %768 = vst [vmem:[%s1715_s26] sm:$0x33] %v1717_v14  ;;  %v771_v4 = vcombine.high %v1717_v14, %v1717_v14 }
 0x101   : > { %854 = vrot.lane.b32.xlu1 %v1717_v14, %s1343_s7  ;;  %1011 = vperm.xlu0 %1310, %v1485_v22  }
 0x105   : > { %894 = vrot.lane.b32.xlu1 %v1717_v14, %s1348_s8  ;;  %856 = vrot.lane.b32.xlu0 %v771_v4, %s1343_s7 }
 0x106   : > { %1313 = vset.pattern.permute.xlu0 %v1352_v16  ;;  %v1146_v16 = vld [vmem:[%s1917_s5] sm:$0x3] }
 0x109   : > { %986 = vrot.lane.b32.xlu1 %v1717_v14, %s1354_s10  ;;  %1075 = vperm.xlu0 %1313, %v1485_v22  }
 0x10d   : > { %1026 = vrot.lane.b32.xlu1 %v1717_v14, %s1351_s9  ;;  %1028 = vrot.lane.b32.xlu0 %v771_v4, %s1351_s9 }
 0x10e   : > { %1314 = vset.pattern.permute.xlu0 %v1355_v18 }
 0x111   : > { %1091 = vperm.xlu0 %1314, %v1485_v22   ;;  %775 = vrot.lane.b32.xlu1 %v771_v4, %s1340_s29 }
 0x115   : > { %1108 = vrot.lane.b32.xlu0 %v771_v4, %s1357_s11  ;;  %816 = vrot.lane.b32.xlu1 %v771_v4, %s1341_s30 }
 0x116   : > { %1317 = vset.pattern.permute.xlu0 %v1337_v2  ;;  %v784_v2 = vpop.permute.xlu1 %783 }
 0x119   : > { %1066 = vrot.lane.b32.xlu1 %v1717_v14, %s1359_s16  ;;  %1149 = vperm.xlu0 %1317, %v1146_v16  }
 0x11a   : > { %v800_v18 = vpop.permute.xlu1 %799 }
 0x11d   : > { %896 = vrot.lane.b32.xlu1 %v771_v4, %s1348_s8 }
 0x11e   : > { %v1759_v15 = vpop.permute.xlu1 %863 }
 0x121   : > { %988 = vrot.lane.b32.xlu1 %v771_v4, %s1354_s10 }
 0x122   : > { %v1761_v19 = vpop.permute.xlu1 %879 }
 0x125   : > { %1115 = vperm.xlu1 %1315, %v1485_v22  }
 0x126   : > { %v1763_v20 = vpop.permute.xlu1 %935 }
 0x129   : > { %1106 = vrot.lane.b32.xlu1 %v1717_v14, %s1357_s11 }
 0x12a   : > { %1316 = vset.pattern.permute.xlu1 %v1361_v24  ;;  %v1765_v17 = vpop.permute.xlu1 %961  ;;  %v1771_v24 = vpop.permute.xlu0 %903 }
 0x12d   : > { %1068 = vrot.lane.b32.xlu1 %v771_v4, %s1359_s16 }
 0x12e   : > { %v1767_v28 = vpop.permute.xlu1 %1035 }
 0x131   : > { %1131 = vperm.xlu1 %1316, %v1485_v22   ;;  %v1773_v22 = vpop.permute.xlu0 %919 }
 0x132   : > { %v1769_v30 = vpop.permute.xlu1 %1051 }
 0x135   : > { %v1775_v32 = vpop.permute.xlu0 %995 }
 0x16f   : > { %v815_v8 = vpop.permute.xlu1 %814  ;;  %v774_v44 = vpop.permute.xlu0 %773 }
 0x173   : > { %v855_v25 = vpop.permute.xlu1 %854 }
 0x177   : > { %v895_v48 = vpop.permute.xlu1 %894 }
 0x17b   : > { %v1777_v38 = vpop.permute.xlu1 %986 }
 0x17f   : > { %v1779_v41 = vpop.permute.xlu1 %1026 }
 0x180   : > { %v1781_v42 = vpop.permute.xlu0 %1011 }
 0x183   : > { %v776_v49 = vpop.permute.xlu1 %775 }
 0x184   : > { %v777_v50 = vsel %vm281_vm0, %v774_v44, %v776_v49  ;;  %v778_v53 = vsel %vm281_vm0, %v776_v49, %v774_v44  ;;  %v857_v54 = vpop.permute.xlu0 %856  ;;  %v945_v49 = vrot.slane %v1717_v14, %v944_v1 }
 0x185   : > { %v779_v55 = vmul.f32 %v778_v53, %v1532_v39  ;;  %v780_v56 = vmul.f32 %v777_v50, %v1535_v40  ;;  %v858_v52 = vsel %vm386_vm2, %v855_v25, %v857_v54  ;;  %v859_v43 = vsel %vm386_vm2, %v857_v54, %v855_v25 }
 0x186   : > { %v860_v39 = vmul.f32 %v859_v43, %v1570_v62  ;;  %v861_v40 = vmul.f32 %v858_v52, %v1573_v63  ;;  %v970_v62 = vsub.s32 5, %v1515_v31 }
 0x187   : > { %v789_v57 = vrot.slane %v779_v55, %v1520_v34  ;;  %v793_v59 = vrot.slane %v780_v56, %v1520_v34  ;;  %v817_v58 = vpop.permute.xlu1 %816  ;;  %v805_v61 = vrot.slane %v779_v55, %v1523_v35  ;;  %v809_v0 = vrot.slane %v780_v56, %v1523_v35 }
 0x188   : > { %v818_v7 = vsel %vm334_vm1, %v815_v8, %v817_v58  ;;  %v819_v9 = vsel %vm334_vm1, %v817_v58, %v815_v8  ;;  %v941_v8 = vrot.slane %v1717_v14, %v1520_v34  ;;  %v885_v55 = vrot.slane %v860_v39, %v1523_v35 }
 0x189   : > { %v794_v36 = vmul.f32 %v789_v57, %v784_v2  ;;  %v795_v6 = vmul.f32 %v793_v59, %v784_v2  ;;  %v810_v3 = vmul.f32 %v805_v61, %v800_v18  ;;  %v811_v11 = vmul.f32 %v809_v0, %v800_v18 }
 0x18a   : > { %v820_v4 = vmul.f32 %v819_v9, %v1546_v45  ;;  %v821_v16 = vmul.f32 %v818_v7, %v1549_v46  ;;  %v869_v18 = vrot.slane %v860_v39, %v1520_v34  ;;  %v873_v45 = vrot.slane %v861_v40, %v1520_v34 }
 0x18b   : > { %v1804_v10 = vpop.permute.xlu1 %1066  ;;  %v812_v50 = vadd.f32 %v810_v3, %v794_v36  ;;  %v813_v31 = vadd.f32 %v811_v11, %v795_v6  ;;  %v889_v56 = vrot.slane %v861_v40, %v1523_v35  ;;  %v967_v0 = vrot.slane %v1717_v14, %v1523_v35 }
 0x18c   : > { %v829_v63 = vrot.slane %v820_v4, %v1520_v34  ;;  %v833_v2 = vrot.slane %v821_v16, %v1520_v34  ;;  %v845_v25 = vrot.slane %v820_v4, %v1523_v35  ;;  %v849_v44 = vrot.slane %v821_v16, %v1523_v35  ;;  %v1835_v16 = vpop.permute.xlu0 %1075 }
 0x18d   : > { %v971_v1 = vrot.slane %v1717_v14, %v970_v62  ;;  %v875_v39 = vmul.f32 %v873_v45, %v1759_v15  ;;  %v951_v9 = vrot.slane %v941_v8, %v1520_v34  ;;  %v890_v3 = vmul.f32 %v885_v55, %v1761_v19 }
 0x18e   : > { %v834_v53 = vmul.f32 %v829_v63, %v824_v27  ;;  %v835_v54 = vmul.f32 %v833_v2, %v824_v27  ;;  %v850_v57 = vmul.f32 %v845_v25, %v840_v29  ;;  %v851_v59 = vmul.f32 %v849_v44, %v840_v29 }
 0x18f   : > { %v897_v46 = vpop.permute.xlu1 %896  ;;  %v874_v27 = vmul.f32 %v869_v18, %v1759_v15  ;;  %v891_v11 = vmul.f32 %v889_v56, %v1761_v19  ;;  %v981_v18 = vrot.slane %v971_v1, %v1523_v35 }
 0x190   : > { %v836_v52 = vadd.f32 %v834_v53, %v812_v50  ;;  %v837_v43 = vadd.f32 %v835_v54, %v813_v31  ;;  %v898_v58 = vsel %vm438_vm3, %v895_v48, %v897_v46  ;;  %v899_v61 = vsel %vm438_vm3, %v897_v46, %v895_v48  ;;  %v1029_v56 = vpop.permute.xlu0 %1028 }
 0x191   : > { %v900_v29 = vmul.f32 %v899_v61, %v1588_v21  ;;  %v901_v6 = vmul.f32 %v898_v58, %v1591_v23  ;;  %v955_v48 = vrot.slane %v945_v49, %v1520_v34  ;;  %v977_v49 = vrot.slane %v967_v0, %v1523_v35 }
 0x192   : > { %v852_v40 = vadd.f32 %v850_v57, %v836_v52  ;;  %v853_v36 = vadd.f32 %v851_v59, %v837_v43  ;;  %v956_v54 = vmul.f32 %v951_v9, %v1763_v20  ;;  %v983_v52 = vmul.f32 %v981_v18, %v1765_v17 }
 0x193   : > { %v989_v7 = vpop.permute.xlu1 %988  ;;  %v909_v15 = vrot.slane %v900_v29, %v1520_v34  ;;  %v913_v62 = vrot.slane %v901_v6, %v1520_v34  ;;  %v925_v21 = vrot.slane %v900_v29, %v1523_v35  ;;  %v929_v23 = vrot.slane %v901_v6, %v1523_v35 }
 0x194   : > { %v876_v14 = vadd.f32 %v874_v27, %v852_v40  ;;  %v877_v4 = vadd.f32 %v875_v39, %v853_v36  ;;  %v990_v63 = vsel %vm542_vm4, %v1777_v38, %v989_v7  ;;  %v991_v19 = vsel %vm542_vm4, %v989_v7, %v1777_v38  ;;  %v1092_v29 = vpop.permute.xlu0 %1091 }
 0x195   : > { %v914_v44 = vmul.f32 %v909_v15, %v1771_v24  ;;  %v915_v8 = vmul.f32 %v913_v62, %v1771_v24  ;;  %v930_v50 = vmul.f32 %v925_v21, %v1773_v22  ;;  %v931_v31 = vmul.f32 %v929_v23, %v1773_v22 }
 0x196   : > { %v892_v2 = vadd.f32 %v890_v3, %v876_v14  ;;  %v893_v25 = vadd.f32 %v891_v11, %v877_v4  ;;  %v992_v53 = vmul.f32 %v990_v63, %v1626_v12  ;;  %v993_v38 = vmul.f32 %v991_v19, %v1629_v13 }
 0x197   : > { %v957_v55 = vmul.f32 %v955_v48, %v1763_v20  ;;  %v982_v59 = vmul.f32 %v977_v49, %v1765_v17  ;;  %v1030_v22 = vsel %vm594_vm5, %v1779_v41, %v1029_v56  ;;  %v1031_v12 = vsel %vm594_vm5, %v1029_v56, %v1779_v41 }
 0x198   : > { %v916_v45 = vadd.f32 %v914_v44, %v892_v2  ;;  %v917_v46 = vadd.f32 %v915_v8, %v893_v25  ;;  %v1001_v13 = vrot.slane %v992_v53, %v1520_v34  ;;  %v1005_v20 = vrot.slane %v993_v38, %v1520_v34  ;;  %v1109_v15 = vpop.permute.xlu0 %1108 }
 0x199   : > { %v1032_v1 = vmul.f32 %v1030_v22, %v1648_v47  ;;  %v1033_v17 = vmul.f32 %v1031_v12, %v1651_v51  ;;  %v1017_v40 = vrot.slane %v992_v53, %v1523_v35  ;;  %v1021_v36 = vrot.slane %v993_v38, %v1523_v35 }
 0x19a   : > { %v932_v24 = vadd.f32 %v930_v50, %v916_v45  ;;  %v933_v57 = vadd.f32 %v931_v31, %v917_v46  ;;  %v1006_v27 = vmul.f32 %v1001_v13, %v1775_v32  ;;  %v1007_v39 = vmul.f32 %v1005_v20, %v1775_v32 }
 0x19b   : > { %v1041_v9 = vrot.slane %v1032_v1, %v1520_v34  ;;  %v1045_v48 = vrot.slane %v1033_v17, %v1520_v34  ;;  %v1022_v47 = vmul.f32 %v1017_v40, %v1781_v42  ;;  %v1023_v51 = vmul.f32 %v1021_v36, %v1781_v42 }
 0x19c   : > { %v958_v43 = vadd.f32 %v956_v54, %v932_v24  ;;  %v959_v58 = vadd.f32 %v957_v55, %v933_v57  ;;  %v1057_v32 = vrot.slane %v1032_v1, %v1523_v35  ;;  %v1061_v4 = vrot.slane %v1033_v17, %v1523_v35 }
 0x19d   : > { %v1046_v62 = vmul.f32 %v1041_v9, %v1767_v28  ;;  %v1047_v21 = vmul.f32 %v1045_v48, %v1767_v28 }
 0x19e   : > { %v984_v61 = vadd.f32 %v982_v59, %v958_v43  ;;  %v985_v0 = vadd.f32 %v983_v52, %v959_v58  ;;  %v1062_v45 = vmul.f32 %v1057_v32, %v1769_v30  ;;  %v1063_v46 = vmul.f32 %v1061_v4, %v1769_v30 }
 0x1a0   : > { %v1008_v6 = vadd.f32 %v1006_v27, %v984_v61  ;;  %v1009_v7 = vadd.f32 %v1007_v39, %v985_v0  ;;  %v1150_v61 = vpop.permute.xlu0 %1149 }
 0x1a2   : > { %v1024_v11 = vadd.f32 %v1022_v47, %v1008_v6  ;;  %v1025_v14 = vadd.f32 %v1023_v51, %v1009_v7  ;;  %v1327_v6 = vld [vmem:[%s1422_s28] sm:$0xff] }
 0x1a4   : > { %v1116_v41 = vpop.permute.xlu1 %1115  ;;  %v1048_v42 = vadd.f32 %v1046_v62, %v1024_v11  ;;  %v1049_v2 = vadd.f32 %v1047_v21, %v1025_v14 }
 0x1a8   : > { %v1107_v3 = vpop.permute.xlu1 %1106 }
 0x1a9   : > { %v1110_v23 = vsel %vm698_vm7, %v1107_v3, %v1109_v15  ;;  %v1111_v63 = vsel %vm698_vm7, %v1109_v15, %v1107_v3 }
 0x1aa   : > { %v1112_v8 = vmul.f32 %v1110_v23, %v1692_v5  ;;  %v1113_v28 = vmul.f32 %v1111_v63, %v1695_v26  ;;  %v1065_v5 = vadd.f32 %v1063_v46, %v1049_v2 }
 0x1ac   : > { %v1069_v19 = vpop.permute.xlu1 %1068  ;;  %v1121_v26 = vrot.slane %v1112_v8, %v1520_v34  ;;  %v1137_v24 = vrot.slane %v1112_v8, %v1523_v35  ;;  %v1141_v57 = vrot.slane %v1113_v28, %v1523_v35 }
 0x1ad   : > { %v1070_v25 = vsel %vm646_vm6, %v1804_v10, %v1069_v19  ;;  %v1071_v44 = vsel %vm646_vm6, %v1069_v19, %v1804_v10  ;;  %v1064_v10 = vadd.f32 %v1062_v45, %v1048_v42 }
 0x1ae   : > { %v1072_v49 = vmul.f32 %v1070_v25, %v1672_v60  ;;  %v1073_v18 = vmul.f32 %v1071_v44, %v1675_v37  ;;  %v1125_v60 = vrot.slane %v1113_v28, %v1520_v34  ;;  %v1126_v58 = vmul.f32 %v1121_v26, %v1116_v41 }
 0x1b0   : > { %v1081_v50 = vrot.slane %v1072_v49, %v1520_v34  ;;  %v1085_v31 = vrot.slane %v1073_v18, %v1520_v34  ;;  %v1097_v53 = vrot.slane %v1072_v49, %v1523_v35  ;;  %v1101_v33 = vrot.slane %v1073_v18, %v1523_v35  ;;  %v1132_v59 = vpop.permute.xlu1 %1131 }
 0x1b1   : > { %v1127_v22 = vmul.f32 %v1125_v60, %v1116_v41  ;;  %v1142_v12 = vmul.f32 %v1137_v24, %v1132_v59  ;;  %v1143_v13 = vmul.f32 %v1141_v57, %v1132_v59 }
 0x1b2   : > { %v1086_v37 = vmul.f32 %v1081_v50, %v1835_v16  ;;  %v1087_v38 = vmul.f32 %v1085_v31, %v1835_v16  ;;  %v1102_v54 = vmul.f32 %v1097_v53, %v1092_v29  ;;  %v1103_v30 = vmul.f32 %v1101_v33, %v1092_v29 }
 0x1b4   : > { %v1088_v55 = vadd.f32 %v1086_v37, %v1064_v10  ;;  %v1089_v56 = vadd.f32 %v1087_v38, %v1065_v5 }
 0x1b6   : > { %v1104_v52 = vadd.f32 %v1102_v54, %v1088_v55  ;;  %v1105_v43 = vadd.f32 %v1103_v30, %v1089_v56 }
 0x1b8   : > { %v1128_v34 = vadd.f32 %v1126_v58, %v1104_v52  ;;  %v1129_v20 = vadd.f32 %v1127_v22, %v1105_v43 }
 0x1ba   : > { %v1144_v16 = vadd.f32 %v1142_v12, %v1128_v34  ;;  %v1145_v0 = vadd.f32 %v1143_v13, %v1129_v20 }
 0x1bc   : > { %v1152_v1 = vadd.f32 %v1150_v61, %v1144_v16  ;;  %v1153_v17 = vadd.f32 %v1150_v61, %v1145_v0 }
 0x1be   : > { %v1154_v27 = vmul.f32 1.442695, %v1152_v1  ;;  %v1156_v39 = vmul.f32 1.442695, %v1153_v17  ;;  %v1166_v29 = vcombine.low %v1152_v1, %v1153_v17 }
 0x1c0   : > { %1323 = vpow2.f32 %v1154_v27  ;;  %v1167_v9 = vrot.slane %v1166_v29, 6 }
 0x1c1   : > { %1325 = vpow2.f32 %v1156_v39 }
 0x1ca   : > { %v1324_v35 = vpop.eup %1323 }
 0x1cb   : > { %v1326_v40 = vpop.eup %1325 }
 0x1cc   : > { %v1160_v36 = vcombine.low %v1324_v35, %v1326_v40 }
 0x1ce   : > { %v1161_v41 = vrot.slane %v1160_v36, 6 }
 0x1d0   : > { %v1163_v7 = vmul.f32 %v1327_v6, %v1161_v41 }
 0x1d2   : > { %v1169_v48 = vadd.f32 %v1167_v9, %v1163_v7 }
 0x1d4   : > { %1170 = vst [vmem:[%s1715_s26] sm:$0xcc] %v1169_v48 }
 0x1d5 PF: > { %s16_s21 = sadd.s32 1, %s1334_s21  }
 0x1d6   : > { %p13_p4 = scmp.ge.s32.totalorder %s16_s21, 4  }
 0x1d8   :  { %15 = sbr.rel (!%p13_p4) target bundleno = 1 (0x1), region = 81 }

</bundles_post_ra>
